<compile_context>
chip_gen: v5e
topology: v5e:2x2
jax: 0.10.0
libtpu: 0.0.40
codegen_flags: <defaults>
</compile_context>

<pallas_src>
import functools
import math

import jax
import jax.numpy as jnp
from jax.experimental import pallas as pl
from jax.experimental.pallas import tpu as pltpu


# ----------------------------------------------------------------------------
# Kernel
# ----------------------------------------------------------------------------
def _attn_trans_kernel(mem_ref, h_ref, wq_ref, t_ref, attn_ref, tattn_ref, *,
                       scale, scale_on_query):
    bt, ts, D = h_ref.shape
    N = mem_ref.shape[1]

    # 1) q = h @ Wq : one (bt*ts, D) x (D, D) MXU matmul, f32 accumulation.
    h2 = h_ref[...].reshape(bt * ts, D)
    q = jnp.dot(h2, wq_ref[...], preferred_element_type=jnp.float32)
    if scale_on_query:                       # scale the smaller operand
        q = q * scale
    # Keep MXU operands in the memory's native dtype (bf16 stays bf16).
    q = q.astype(mem_ref.dtype).reshape(bt, ts, D)

    # 2) scores for the whole timestep block: batched MXU matmul over the batch
    #    tile; memory is consumed in-place in its native dtype (no f32 copy).
    scores = jnp.einsum("btd,bnd->btn", q, mem_ref[...],
                        preferred_element_type=jnp.float32)      # (bt, ts, N)
    if not scale_on_query:
        scores = scores * scale

    # 3) softmax over memory slots; reciprocal goes to the (idle) EUP.
    m = jnp.max(scores, axis=-1, keepdims=True)
    e = jnp.exp(scores - m)
    attn = e * pl.reciprocal(jnp.sum(e, axis=-1, keepdims=True), approx=True)
    attn_ref[...] = attn.astype(attn_ref.dtype)

    # 4) transition: (bt*ts, N) x (N, N) MXU matmul + renormalization.
    t = jnp.dot(attn.reshape(bt * ts, N).astype(t_ref.dtype), t_ref[...],
                preferred_element_type=jnp.float32).reshape(bt, ts, N)
    t = t * pl.reciprocal(jnp.sum(t, axis=-1, keepdims=True) + 1e-9, approx=True)
    tattn_ref[...] = t.astype(tattn_ref.dtype)


# ----------------------------------------------------------------------------
# Generation / VMEM-aware tiling
# ----------------------------------------------------------------------------
def _round_up(x, m):
    return ((x + m - 1) // m) * m


def _sublane_quantum(*dtypes):
    isz = min(jnp.dtype(d).itemsize for d in dtypes)
    return {4: 8, 2: 16, 1: 32}.get(isz, 8)


def _tpu_generation_and_vmem():
    """Returns (generation, timestep-block target, vmem_limit_bytes)."""
    kind = ""
    try:
        kind = jax.devices()[0].device_kind.lower()
    except Exception:
        pass
    phys = None
    try:
        info = pltpu.get_tpu_info()
        for attr in ("vmem_capacity_bytes", "vmem_size_bytes", "vmem_bytes"):
            v = getattr(info, attr, None)
            if v:
                phys = int(v)
                break
    except Exception:
        phys = None

    if ("v5 lite" in kind) or ("v5e" in kind) or ("v5lite" in kind):
        gen, ts_target, limit = "v5e", 128, 64 << 20     # 128 MiB physical
    elif "v6" in kind:
        gen, ts_target, limit = "v6e", 256, 96 << 20     # 128 MiB physical
    elif "v7" in kind:
        gen, ts_target, limit = "v7x", 256, 48 << 20     # 64 MiB physical
    else:
        gen, ts_target, limit = "unknown", 256, 48 << 20  # conservative
    if phys:
        limit = min(limit, max(phys - (8 << 20), 16 << 20))
    return gen, ts_target, int(limit)


def _choose_tiles(B, S, N, D, mem_dtype, h_dtype, param_dtype, out_dtype,
                  ts_target, vmem_limit):
    """Pick (bt, ts) so the full pipelined working set fits the scoped VMEM."""
    mem_isz = jnp.dtype(mem_dtype).itemsize
    h_isz = jnp.dtype(h_dtype).itemsize
    p_isz = jnp.dtype(param_dtype).itemsize
    o_isz = jnp.dtype(out_dtype).itemsize
    q_h = _sublane_quantum(h_dtype, mem_dtype)           # sublane quantum
    budget = int(0.75 * vmem_limit)                       # compiler-scratch headroom

    def footprint(bt, ts):
        mem_slab = 2 * bt * N * D * mem_isz               # double-buffered memory tile
        hid_slab = 2 * bt * ts * D * h_isz                # double-buffered hidden block
        weights = 2 * (D * D + N * N) * p_isz             # Wq + T (counted, worst case x2)
        outs = 2 * 2 * bt * ts * N * o_isz                # two outputs, double-buffered
        temps = 4 * bt * ts * (2 * N + D + 2)             # f32 q/scores/exp intermediates
        return mem_slab + hid_slab + weights + outs + temps

    def bt_candidates():
        cands = {d for d in range(q_h, B + 1, q_h) if B % d == 0}
        cands.add(B)                                      # full batch dim always legal
        return sorted(cands, reverse=True)

    # Timestep block: as large as the per-generation target, never beyond the
    # (quantum-padded) sequence, always a sublane-quantum multiple.
    ts = max(q_h, _round_up(min(ts_target, _round_up(S, q_h)), q_h))
    while True:
        for bt in bt_candidates():
            if footprint(bt, ts) <= budget:
                return bt, ts, q_h
        if ts // 2 >= q_h:
            ts = _round_up(ts // 2, q_h)
        else:
            # Nothing fits the soft budget; fall back to the smallest legal
            # tile and let the raised vmem_limit absorb it.
            return bt_candidates()[-1], q_h, q_h


# ----------------------------------------------------------------------------
# Wrapper
# ----------------------------------------------------------------------------
def attention_transition_sequence(memory, hidden_seq, wq, trans, *,
                                  out_dtype=jnp.float32):
    """memory (B,N,D), hidden_seq (S,B,D), wq (D,D), trans (N,N)
       -> attn (S,B,N), trans_attn (S,B,N)."""
    S, B, D = hidden_seq.shape
    Bm, N, Dm = memory.shape
    assert Bm == B and Dm == D and wq.shape == (D, D) and trans.shape == (N, N)

    gen, ts_target, vmem_limit = _tpu_generation_and_vmem()
    bt, ts, q_h = _choose_tiles(B, S, N, D, memory.dtype, hidden_seq.dtype,
                                wq.dtype, out_dtype, ts_target, vmem_limit)
    S_pad = _round_up(S, ts)
    nbt, nts = B // bt, S_pad // ts

    # v7x has 2 TensorCores: keep the sharded (parallel) grid extent >= 2.
    if gen == "v7x" and nbt * nts < 2:
        if ts // 2 >= q_h:
            ts = _round_up(ts // 2, q_h)
            S_pad = _round_up(S, ts)
            nts = S_pad // ts
        elif bt % 2 == 0:
            bt //= 2
            nbt = B // bt

    scale = 1.0 / math.sqrt(D)
    kernel = functools.partial(_attn_trans_kernel, scale=scale,
                               scale_on_query=(D < N))

    # Batch-major layout inside the kernel keeps the batched matmul's batch dim
    # leading; pad the time axis so ts divides it (zero rows give a harmless
    # uniform softmax that is sliced away below).
    hidden_bsd = jnp.transpose(hidden_seq, (1, 0, 2))            # (B, S, D)
    if S_pad != S:
        hidden_bsd = jnp.pad(hidden_bsd, ((0, 0), (0, S_pad - S), (0, 0)))

    attn, tattn = pl.pallas_call(
        kernel,
        out_shape=(jax.ShapeDtypeStruct((B, S_pad, N), out_dtype),
                   jax.ShapeDtypeStruct((B, S_pad, N), out_dtype)),
        # Batch tiles outer, timestep blocks inner: the memory tile's block
        # index is constant along the inner axis, so it stays VMEM-resident.
        grid=(nbt, nts),
        in_specs=[
            pl.BlockSpec((bt, N, D), lambda i, s: (i, 0, 0)),    # memory tile (resident)
            pl.BlockSpec((bt, ts, D), lambda i, s: (i, s, 0)),   # hidden block
            pl.BlockSpec((D, D), lambda i, s: (0, 0)),           # Wq (constant index, fetched once)
            pl.BlockSpec((N, N), lambda i, s: (0, 0)),           # T  (constant index, fetched once)
        ],
        out_specs=(
            pl.BlockSpec((bt, ts, N), lambda i, s: (i, s, 0)),
            pl.BlockSpec((bt, ts, N), lambda i, s: (i, s, 0)),
        ),
        compiler_params=pltpu.CompilerParams(
            dimension_semantics=("parallel", "parallel"),
            vmem_limit_bytes=int(vmem_limit)),
    )(memory, hidden_bsd, wq, trans)

    attn = jnp.transpose(attn[:, :S, :], (1, 0, 2))
    tattn = jnp.transpose(tattn[:, :S, :], (1, 0, 2))
    return attn, tattn


def attention_transition_step(memory, hidden, wq, trans, *, out_dtype=jnp.float32):
    """Single tracked step.  NOTE: launch/DMA-bound (memory, Wq, T are
    re-transferred for one step of work) -- prefer the sequence path."""
    attn, tattn = attention_transition_sequence(memory, hidden[None], wq, trans,
                                                out_dtype=out_dtype)
    return attn[0], tattn[0]


class AttentionTracker:
    """Pallas-backed analogue of gre.attention_tracker.AttentionTracker."""

    def __init__(self, wq, transition, out_dtype=jnp.float32):
        self.attn_history = []
        self.trans_history = []
        self.wq = wq                  # parameters of the wrapped "attention" module
        self.transition = transition  # parameters of the wrapped "transition" module
        self.out_dtype = out_dtype    # bf16 halves history writeback traffic if tolerated

    def forward(self, memory, hidden):
        # TODO(synk): reference forward() raises NotImplementedError (abstract
        # tracker); we run the attention+transition step it is meant to track.
        attn, tattn = attention_transition_step(memory, hidden, self.wq,
                                                self.transition,
                                                out_dtype=self.out_dtype)
        self.attn_history.append(attn)
        self.trans_history.append(tattn)
        return attn, tattn

    def forward_sequence(self, memory, hidden_seq):
        """Run S timesteps in ONE pallas_call; history is one stacked (S,B,N)
        device array instead of S small buffers."""
        attn, tattn = attention_transition_sequence(memory, hidden_seq, self.wq,
                                                    self.transition,
                                                    out_dtype=self.out_dtype)
        self.attn_history.append(attn)
        self.trans_history.append(tattn)
        return attn, tattn

    def initialize(self, engine, *args, **kwargs):
        # TODO(synk): reference delegates to the wrapped attention module's
        # initialize(); there is no stateful sub-module here.
        return None

    def get_attn(self):
        # TODO(synk): reference returns a sparse (idx, v)->1 tensor from the
        # wrapped attention module; we return the most recent dense attention.
        if not self.attn_history:
            return None
        last = self.attn_history[-1]
        return last[-1] if last.ndim == 3 else last


# ----------------------------------------------------------------------------
# Reference + self-test
# ----------------------------------------------------------------------------
def _reference(memory, hidden, wq, trans):
    q = hidden @ wq                                        # (B, D)
    scores = jnp.einsum("bd,bnd->bn", q, memory) / math.sqrt(memory.shape[-1])
    attn = jax.nn.softmax(scores, axis=-1)
    t = attn @ trans
    t = t / (jnp.sum(t, axis=-1, keepdims=True) + 1e-9)
    return attn, t


if __name__ == "__main__":
    B, N, D, S = 2, 8, 32, 4
    key = jax.random.PRNGKey(0)
    k_mem, k_h, k_wq, k_t, k_seq = jax.random.split(key, 5)

    memory = jax.random.normal(k_mem, (B, N, D), dtype=jnp.float32)
    hidden = jax.random.normal(k_h, (B, D), dtype=jnp.float32)
    hidden_seq = jax.random.normal(k_seq, (S, B, D), dtype=jnp.float32)
    # Deterministic "parameters" of the wrapped modules.
    wq = 0.1 * jax.random.normal(k_wq, (D, D), dtype=jnp.float32)
    transition = jax.nn.softmax(jax.random.normal(k_t, (N, N), dtype=jnp.float32), axis=-1)

    tracker = AttentionTracker(wq, transition)

    # Single tracked step.
    attn, tattn = tracker.forward(memory, hidden)
    jax.block_until_ready((attn, tattn))
    ref_attn, ref_tattn = _reference(memory, hidden, wq, transition)
    # approx=True reciprocal (EUP) => slightly looser tolerance than exact path.
    assert jnp.allclose(attn, ref_attn, atol=1e-3, rtol=1e-3)
    assert jnp.allclose(tattn, ref_tattn, atol=1e-3, rtol=1e-3)

    # Whole sequence in one launch (timestep-blocked grid).
    attn_s, tattn_s = tracker.forward_sequence(memory, hidden_seq)
    jax.block_until_ready((attn_s, tattn_s))
    for s in range(S):
        ra, rt = _reference(memory, hidden_seq[s], wq, transition)
        assert jnp.allclose(attn_s[s], ra, atol=1e-3, rtol=1e-3)
        assert jnp.allclose(tattn_s[s], rt, atol=1e-3, rtol=1e-3)

    assert tracker.get_attn() is not None
    print("KERNEL_OK")
</pallas_src>

<mosaic_0001>
module attributes {stable_mosaic.version = 11 : i64} {
  func.func @_attn_trans_kernel(%arg0: i32, %arg1: i32, %arg2: memref<2x8x32xf32, #tpu.memory_space<vmem>>, %arg3: memref<2x8x32xf32, #tpu.memory_space<vmem>>, %arg4: memref<32x32xf32, #tpu.memory_space<vmem>>, %arg5: memref<8x8xf32, #tpu.memory_space<vmem>>, %arg6: memref<2x8x8xf32, #tpu.memory_space<vmem>>, %arg7: memref<2x8x8xf32, #tpu.memory_space<vmem>>) attributes {dimension_semantics = [#tpu.dimension_semantics<parallel>, #tpu.dimension_semantics<parallel>], iteration_bounds = array<i64: 1, 1>, scalar_prefetch = 0 : i64, scratch_operands = 0 : i64, tpu.core_type = #tpu.core_type<tc>, window_params = [{transform_indices = @transform_0, window_bounds = array<i64: 2, 8, 32>}, {transform_indices = @transform_1, window_bounds = array<i64: 2, 8, 32>}, {pipeline_mode = #tpu.pipeline_mode<synchronous>, transform_indices = @transform_2, window_bounds = array<i64: 32, 32>}, {pipeline_mode = #tpu.pipeline_mode<synchronous>, transform_indices = @transform_3, window_bounds = array<i64: 8, 8>}, {transform_indices = @transform_4, window_bounds = array<i64: 2, 8, 8>}, {transform_indices = @transform_5, window_bounds = array<i64: 2, 8, 8>}]} {
    %c0 = arith.constant 0 : index
    %c0_0 = arith.constant 0 : index
    %c0_1 = arith.constant 0 : index
    %0 = vector.load %arg3[%c0, %c0_0, %c0_1] : memref<2x8x32xf32, #tpu.memory_space<vmem>>, vector<2x8x32xf32>
    %1 = vector.shape_cast %0 : vector<2x8x32xf32> to vector<16x32xf32>
    %c0_2 = arith.constant 0 : index
    %c0_3 = arith.constant 0 : index
    %2 = vector.load %arg4[%c0_2, %c0_3] : memref<32x32xf32, #tpu.memory_space<vmem>>, vector<32x32xf32>
    %cst = arith.constant dense<0.000000e+00> : vector<16x32xf32>
    %3 = tpu.matmul %1, %2, %cst {dimension_numbers = #tpu.dot_dimension_numbers<[1], [0], [0], [1], [0, 0, 1, 1], [], []>} : vector<16x32xf32>, vector<32x32xf32>, vector<16x32xf32> -> vector<16x32xf32>
    %4 = vector.shape_cast %3 : vector<16x32xf32> to vector<2x8x32xf32>
    %c0_4 = arith.constant 0 : index
    %c0_5 = arith.constant 0 : index
    %c0_6 = arith.constant 0 : index
    %5 = vector.load %arg2[%c0_4, %c0_5, %c0_6] : memref<2x8x32xf32, #tpu.memory_space<vmem>>, vector<2x8x32xf32>
    "tpu.trace_start"() <{level = 10 : i32, message = "btd,bnd->btn"}> : () -> ()
    %cst_7 = arith.constant dense<0.000000e+00> : vector<2x8x8xf32>
    %6 = tpu.matmul %4, %5, %cst_7 {dimension_numbers = #tpu.dot_dimension_numbers<[2], [2], [1], [1], [0, 0, 0, 1, 1, 1], [0], [0]>} : vector<2x8x32xf32>, vector<2x8x32xf32>, vector<2x8x8xf32> -> vector<2x8x8xf32>
    "tpu.trace_stop"() : () -> ()
    %cst_8 = arith.constant 0.176776692 : f32
    %7 = vector.broadcast %cst_8 : f32 to vector<2x8x8xf32>
    %8 = arith.mulf %6, %7 : vector<2x8x8xf32>
    %cst_9 = arith.constant dense<0xFF800000> : vector<2x8xf32>
    %9 = vector.multi_reduction <maximumf>, %8, %cst_9 [2] : vector<2x8x8xf32> to vector<2x8xf32>
    %10 = vector.shape_cast %9 : vector<2x8xf32> to vector<2x8x1xf32>
    %11 = vector.broadcast %10 : vector<2x8x1xf32> to vector<2x8x8xf32>
    %12 = arith.subf %8, %11 : vector<2x8x8xf32>
    %13 = math.exp %12 : vector<2x8x8xf32>
    %cst_10 = arith.constant dense<0.000000e+00> : vector<2x8xf32>
    %14 = vector.multi_reduction <add>, %13, %cst_10 [2] : vector<2x8x8xf32> to vector<2x8xf32>
    %15 = vector.shape_cast %14 : vector<2x8xf32> to vector<2x8x1xf32>
    %16 = tpu.reciprocal %15 {approx = true} : vector<2x8x1xf32> -> vector<2x8x1xf32>
    %17 = vector.broadcast %16 : vector<2x8x1xf32> to vector<2x8x8xf32>
    %18 = arith.mulf %13, %17 : vector<2x8x8xf32>
    %c0_11 = arith.constant 0 : index
    %c0_12 = arith.constant 0 : index
    %c0_13 = arith.constant 0 : index
    %19 = vector.load %arg6[%c0_11, %c0_12, %c0_13] : memref<2x8x8xf32, #tpu.memory_space<vmem>>, vector<2x8x8xf32>
    tpu.vector_store %arg6[%c0_11, %c0_12, %c0_13], %18 {strides = array<i32>} : memref<2x8x8xf32, #tpu.memory_space<vmem>>, vector<2x8x8xf32>,
    %20 = vector.shape_cast %18 : vector<2x8x8xf32> to vector<16x8xf32>
    %c0_14 = arith.constant 0 : index
    %c0_15 = arith.constant 0 : index
    %21 = vector.load %arg5[%c0_14, %c0_15] : memref<8x8xf32, #tpu.memory_space<vmem>>, vector<8x8xf32>
    %cst_16 = arith.constant dense<0.000000e+00> : vector<16x8xf32>
    %22 = tpu.matmul %20, %21, %cst_16 {dimension_numbers = #tpu.dot_dimension_numbers<[1], [0], [0], [1], [0, 0, 1, 1], [], []>} : vector<16x8xf32>, vector<8x8xf32>, vector<16x8xf32> -> vector<16x8xf32>
    %23 = vector.shape_cast %22 : vector<16x8xf32> to vector<2x8x8xf32>
    %cst_17 = arith.constant dense<0.000000e+00> : vector<2x8xf32>
    %24 = vector.multi_reduction <add>, %23, %cst_17 [2] : vector<2x8x8xf32> to vector<2x8xf32>
    %25 = vector.shape_cast %24 : vector<2x8xf32> to vector<2x8x1xf32>
    %cst_18 = arith.constant 9.99999971E-10 : f32
    %26 = vector.broadcast %cst_18 : f32 to vector<2x8x1xf32>
    %27 = arith.addf %25, %26 : vector<2x8x1xf32>
    %28 = tpu.reciprocal %27 {approx = true} : vector<2x8x1xf32> -> vector<2x8x1xf32>
    %29 = vector.broadcast %28 : vector<2x8x1xf32> to vector<2x8x8xf32>
    %30 = arith.mulf %23, %29 : vector<2x8x8xf32>
    %c0_19 = arith.constant 0 : index
    %c0_20 = arith.constant 0 : index
    %c0_21 = arith.constant 0 : index
    %31 = vector.load %arg7[%c0_19, %c0_20, %c0_21] : memref<2x8x8xf32, #tpu.memory_space<vmem>>, vector<2x8x8xf32>
    tpu.vector_store %arg7[%c0_19, %c0_20, %c0_21], %30 {strides = array<i32>} : memref<2x8x8xf32, #tpu.memory_space<vmem>>, vector<2x8x8xf32>,
    return
  }
  func.func @transform_0(%arg0: i32, %arg1: i32) -> (i32, i32, i32) {
    %c0_i32 = arith.constant 0 : i32
    %c0_i32_0 = arith.constant 0 : i32
    %c0_i32_1 = arith.constant 0 : i32
    return %arg0, %c0_i32, %c0_i32_0 : i32, i32, i32
  }
  func.func @transform_1(%arg0: i32, %arg1: i32) -> (i32, i32, i32) {
    %c0_i32 = arith.constant 0 : i32
    %c0_i32_0 = arith.constant 0 : i32
    return %arg0, %arg1, %c0_i32 : i32, i32, i32
  }
  func.func @transform_2(%arg0: i32, %arg1: i32) -> (i32, i32) {
    %c0_i32 = arith.constant 0 : i32
    %c0_i32_0 = arith.constant 0 : i32
    %c0_i32_1 = arith.constant 0 : i32
    return %c0_i32, %c0_i32_0 : i32, i32
  }
  func.func @transform_3(%arg0: i32, %arg1: i32) -> (i32, i32) {
    %c0_i32 = arith.constant 0 : i32
    %c0_i32_0 = arith.constant 0 : i32
    %c0_i32_1 = arith.constant 0 : i32
    return %c0_i32, %c0_i32_0 : i32, i32
  }
  func.func @transform_4(%arg0: i32, %arg1: i32) -> (i32, i32, i32) {
    %c0_i32 = arith.constant 0 : i32
    %c0_i32_0 = arith.constant 0 : i32
    return %arg0, %arg1, %c0_i32 : i32, i32, i32
  }
  func.func @transform_5(%arg0: i32, %arg1: i32) -> (i32, i32, i32) {
    %c0_i32 = arith.constant 0 : i32
    %c0_i32_0 = arith.constant 0 : i32
    return %arg0, %arg1, %c0_i32 : i32, i32, i32
  }
}

</mosaic_0001>

<bundles_post_ra>
// kernel: tpu_custom_call.1
= control target key start
LH: loop header
LB: loop body
LE: loop exit
PB: predicated region body
PF: predicated region fallthrough
CT: control target
= control target key end

     0   :  { %11 = vsyncpa [#allocation3], 0  ;;  %s553_s0 = inlined_call_operand.hbm [shape: f32[2,8,32], index: 0, kind: input, shape index: {}]   ;;  %s554_s1 = inlined_call_operand.hbm [shape: f32[2,8,32], index: 1, kind: input, shape index: {}]   ;;  %s555_s2 = inlined_call_operand.hbm [shape: f32[32,32], index: 2, kind: input, shape index: {}]   ;;  %s556_s3 = inlined_call_operand.hbm [shape: f32[8,8], index: 3, kind: input, shape index: {}]   ;;  %s557_s4 = inlined_call_operand.hbm [shape: f32[2,8,8], index: 4, kind: output, shape index: {0}]   ;;  %s558_s5 = inlined_call_operand.hbm [shape: f32[2,8,8], index: 5, kind: output, shape index: {1}]  }
   0x1   :  { %12 = vsyncpa [#allocation6], 0 }
   0x2   :  { %13 = vsyncpa [#allocation9], 0 }
   0x3   :  { %14 = vsyncpa [#allocation4], 0 }
   0x4   :  { %15 = vsyncpa [#allocation12], 0  ;;  %s33_s20 = sshll.u32 %s554_s1, 4  ;;  %s464_s21 = smov [#allocation5]   ;;  %s34_s20 = int_to_ptr.hbm [resolvable:$true] %s33_s20 }
   0x5   :  { %s35_s22 = sshll.u32 %s464_s21, 4  ;;  %s20_s25 = sshll.u32 %s553_s0, 4  ;;  %s36_s22 = int_to_ptr.vmem [resolvable:$true] %s35_s22  ;;  %s21_s25 = int_to_ptr.hbm [resolvable:$true] %s20_s25 }
   0x6   :  { %s465_s26 = smov 128   ;;  %s466_s27 = smov 8  }
   0x7   :  { %41 = dma.hbm_to_vmem [thread:$0]  %s34_s20, 256, %s36_s22, [#allocation6], %s465_s26, %s465_s26, %s466_s27  }
   0x8   :  { %s467_s28 = smov [#allocation2]   ;;  %s46_s1 = sshll.u32 %s555_s2, 4  ;;  %s47_s1 = int_to_ptr.hbm [resolvable:$true] %s46_s1 }
   0x9   :  { %s22_s29 = sshll.u32 %s467_s28, 4  ;;  %s60_s8 = sshll.u32 %s556_s3, 4  ;;  %s23_s29 = int_to_ptr.vmem [resolvable:$true] %s22_s29  ;;  %s61_s8 = int_to_ptr.hbm [resolvable:$true] %s60_s8 }
   0xa   :  { %28 = dma.hbm_to_vmem [thread:$0]  %s21_s25, 256, %s23_s29, [#allocation3], %s465_s26, %s465_s26, %s466_s27  }
   0xb   :  { %s468_s9 = smov [#allocation7]   ;;  %s469_s11 = smov [#allocation8]  }
   0xc   :  { %s48_s10 = sshll.u32 %s468_s9, 4  ;;  %s62_s2 = sshll.u32 %s469_s11, 4  ;;  %s49_s10 = int_to_ptr.vmem [resolvable:$true] %s48_s10  ;;  %s63_s2 = int_to_ptr.vmem [resolvable:$true] %s62_s2 }
   0xd   :  { %54 = dma.hbm_to_vmem [thread:$0]  %s47_s1, 512, %s49_s10, [#allocation6], %s465_s26, %s465_s26, %s466_s27  }
   0xe   :  { %65 = dma.hbm_to_vmem [thread:$0]  %s61_s8, 128, %s63_s2, [#allocation9]  }
   0xf   :  { %454 = dma.done.wait [#allocation3], 256  }
  0x10   :  { %455 = vsyncadd [#allocation3], 4294967040 }
  0x11   :  { %456 = dma.done.wait [#allocation6], 768  }
  0x12   :  { %457 = vsyncadd [#allocation6], 4294966528 }
  0x13   :  { %458 = dma.done.wait [#allocation9], 128  }
  0x14   :  { %459 = vsyncadd [#allocation9], 4294967168  ;;  %v87_v0 = vld [vmem:[#allocation7 + $0x18] sm:$0xff]  ;;  %v86_v1 = vld [vmem:[#allocation7 + $0x10] sm:$0xff]  ;;  %vm88_vm0 = vcmask 261120   ;;  %vm174_vm1 = vcmask 64512  }
  0x15   :  { %107 = vmatpush.msra.mxu0 %v87_v0  ;;  %v85_v2 = vld [vmem:[#allocation7 + $0x8] sm:$0xff]  ;;  %v118_v3 = vld [vmem:[#allocation2] sm:$0xff]  ;;  %v82_v5 = vld [vmem:[#allocation5] sm:$0xff]  ;;  %s470_s3 = smov [#allocation10]   ;;  %s249_s15 = sshll.u32 %s557_s4, 4  ;;  %s250_s15 = int_to_ptr.hbm [resolvable:$true] %s249_s15 }
  0x16   :  { %284 = vmatpush.xpose.msk.msra.mxu1 %vm88_vm0, %v118_v3  ;;  %v84_v4 = vld [vmem:[#allocation7] sm:$0xff]  ;;  %v83_v6 = vld [vmem:[#allocation5 + $0x8] sm:$0xff]  ;;  %v119_v7 = vld [vmem:[#allocation2 + $0x8] sm:$0xff]  ;;  %s247_s12 = sshll.u32 %s470_s3, 4  ;;  %s471_s4 = smov [#allocation11]   ;;  %s248_s12 = int_to_ptr.vmem [resolvable:$true] %s247_s12 }
  0x17   :  { %108 = vmatpush.msra.mxu0 %v86_v1  ;;  %286 = vmatpush.xpose.msk.msra.mxu2 %vm88_vm0, %v119_v7  ;;  %v199_v26 = vld [vmem:[#allocation8] sm:$0xff]  ;;  %s260_s16 = sshll.u32 %s471_s4, 4  ;;  %s262_s19 = sshll.u32 %s558_s5, 4  ;;  %s261_s16 = int_to_ptr.vmem [resolvable:$true] %s260_s16  ;;  %s263_s19 = int_to_ptr.hbm [resolvable:$true] %s262_s19 }
  0x18   :  { %221 = vmatpush.msra.mxu3 %v199_v26 }
  0x19   :  { %109 = vmatpush.msra.mxu0 %v85_v2 }
  0x1b   :  { %110 = vmatpush.msra.mxu0 %v84_v4 }
  0x1c   :  { %282 = vmatmul.msk.f32.vlgmr.msra.gmra.mxu0 %vm88_vm0, %v82_v5 }
  0x24   :  { %283 = vmatmul.msk.f32.gmra.mxu0 %vm88_vm0, %v83_v6 }
  0x99   :  { %v112_v8 = vpop.f32.mrf.mxu0 }
  0x9a   :  { %285 = vmatmul.msk.f32.vlgmr.msra.gmra.mxu1 %vm88_vm0, %v112_v8 }
  0xa1   :  { %v115_v9 = vpop.f32.mrf.mxu0 }
  0xa2   :  { %287 = vmatmul.msk.f32.vlgmr.msra.gmra.mxu2 %vm88_vm0, %v115_v9 }
 0x117   :  { %v143_v10 = vpop.f32.mrf.mxu1 }
 0x118   :  { %v172_v11 = vmul.f32 0.17677669, %v143_v10 }
 0x11a   :  { %v175_v12 = vsel %vm174_vm1, %v172_v11, -inf }
 0x11b   :  { %176 = vmax.xlane.f32.xlu0 %v175_v12 }
 0x125   :  { %v169_v13 = vpop.f32.mrf.mxu2 }
 0x126   :  { %v173_v14 = vmul.f32 0.17677669, %v169_v13 }
 0x128   :  { %v178_v15 = vsel %vm174_vm1, %v173_v14, -inf }
 0x129   :  { %179 = vmax.xlane.f32.xlu0 %v178_v15 }
 0x18e   :  { %v177_v16 = vpop.xlane.xlu0 %176 }
 0x18f   :  { %v181_v17 = vsub.f32 %v172_v11, %v177_v16 }
 0x191   :  { %v183_v18 = vmul.f32 1.442695, %v181_v17 }
 0x193   :  { %298 = vpow2.f32 %v183_v18 }
 0x199   :  { %v299_v19 = vpop.eup %298 }
 0x19a   :  { %v187_v20 = vsel %vm174_vm1, %v299_v19, 0.0 }
 0x19b   :  { %188 = vadd.xlane.f32.xlu1 %v187_v20 }
 0x19c   :  { %v180_v21 = vpop.xlane.xlu0 %179 }
 0x19d   :  { %v182_v22 = vsub.f32 %v173_v14, %v180_v21 }
 0x19f   :  { %v185_v23 = vmul.f32 1.442695, %v182_v22 }
 0x1a1   :  { %300 = vpow2.f32 %v185_v23 }
 0x1a7   :  { %v301_v24 = vpop.eup %300 }
 0x1a8   :  { %v190_v25 = vsel %vm174_vm1, %v301_v24, 0.0 }
 0x1a9   :  { %191 = vadd.xlane.f32.xlu1 %v190_v25 }
 0x20e   :  { %v189_v27 = vpop.xlane.xlu1 %188 }
 0x20f   :  { %302 = vrcp.f32 %v189_v27 }
 0x215   :  { %v303_v28 = vpop.eup %302 }
 0x216   :  { %v195_v29 = vmul.f32 %v303_v28, %v299_v19 }
 0x218   :  { %288 = vmatmul.msk.f32.vlgmr.msra.gmra.mxu3 %vm174_vm1, %v195_v29  ;;  %197 = vst.msk [vmem:[#allocation10] sm:$0xff] %vm174_vm1, %v195_v29 }
 0x21c   :  { %v192_v30 = vpop.xlane.xlu1 %191 }
 0x21d   :  { %304 = vrcp.f32 %v192_v30 }
 0x223   :  { %v305_v31 = vpop.eup %304 }
 0x224   :  { %v196_v32 = vmul.f32 %v305_v31, %v301_v24 }
 0x226   :  { %289 = vmatmul.msk.f32.gmra.mxu3 %vm174_vm1, %v196_v32  ;;  %198 = vst.msk [vmem:[#allocation10 + $0x8] sm:$0xff] %vm174_vm1, %v196_v32 }
 0x227   :  { %255 = dma.vmem_to_hbm [thread:$0]  %s248_s12, 256, %s250_s15, [#allocation4], %s465_s26, %s465_s26, %s466_s27  }
 0x29b   :  { %v223_v33 = vpop.f32.mrf.mxu3 }
 0x29c   :  { %v229_v34 = vsel %vm174_vm1, %v223_v33, 0.0 }
 0x29d   :  { %230 = vadd.xlane.f32.xlu2 %v229_v34 }
 0x2a9   :  { %v226_v35 = vpop.f32.mrf.mxu3 }
 0x2aa   :  { %v232_v36 = vsel %vm174_vm1, %v226_v35, 0.0 }
 0x2ab   :  { %233 = vadd.xlane.f32.xlu2 %v232_v36 }
 0x310   :  { %v231_v37 = vpop.xlane.xlu2 %230 }
 0x311   :  { %v235_v38 = vadd.f32 1e-09, %v231_v37 }
 0x313   :  { %306 = vrcp.f32 %v235_v38 }
 0x319   :  { %v307_v39 = vpop.eup %306 }
 0x31a   :  { %v239_v40 = vmul.f32 %v307_v39, %v223_v33 }
 0x31c   :  { %241 = vst.msk [vmem:[#allocation11] sm:$0xff] %vm174_vm1, %v239_v40 }
 0x31e   :  { %v234_v41 = vpop.xlane.xlu2 %233 }
 0x31f   :  { %v236_v42 = vadd.f32 1e-09, %v234_v41 }
 0x321   :  { %308 = vrcp.f32 %v236_v42 }
 0x327   :  { %v309_v43 = vpop.eup %308 }
 0x328   :  { %v240_v44 = vmul.f32 %v309_v43, %v226_v35 }
 0x32a   :  { %242 = vst.msk [vmem:[#allocation11 + $0x8] sm:$0xff] %vm174_vm1, %v240_v44 }
 0x32b   :  { %268 = dma.vmem_to_hbm [thread:$0]  %s261_s16, 256, %s263_s19, [#allocation12], %s465_s26, %s465_s26, %s466_s27  }
 0x32c   :  { %460 = dma.done.wait [#allocation4], 256  }
 0x32d   :  { %461 = vsyncadd [#allocation4], 4294967040 }
 0x32e   :  { %462 = dma.done.wait [#allocation12], 256  }
 0x32f   :  { %463 = vsyncadd [#allocation12], 4294967040 }
 0x330   :  { %277 = vsyncpa [#allocation3], 1 }
 0x331   :  { %278 = vsyncpa [#allocation6], 1 }
 0x332   :  { %279 = vsyncpa [#allocation9], 1 }
 0x333   :  { %280 = vsyncpa [#allocation4], 1 }
 0x334   :  { %281 = vsyncpa [#allocation12], 1 }

</bundles_post_ra>
